<compile_context>
chip_gen: v5e
topology: v5e:2x2
jax: 0.10.0
libtpu: 0.0.40
codegen_flags: <defaults>
</compile_context>

<pallas_src>
import functools

import jax
import jax.numpy as jnp
from jax.experimental import pallas as pl
from jax.experimental.pallas import tpu as pltpu


def _se_kernel(x_ref, w1t_ref, w2t_ref, o_ref, *, true_hw):
    # x_ref:   (Nb, C, HWp)  block of Nb batch elements, padded HW on lanes.
    # w1t_ref: (C, C_red)    transposed weight of first 1x1 conv  (bias=False)
    # w2t_ref: (C_red, C)    transposed weight of second 1x1 conv (bias=False)
    x = x_ref[...]                                                  # (Nb, C, HWp)

    # AdaptiveAvgPool2d(1): per-element, per-channel mean over HW.
    # Zero padding on HW contributes 0 to the sum; divide by the true HW.
    sums = jnp.sum(x, axis=-1, dtype=jnp.float32)                   # (Nb, C)
    means = sums * (1.0 / float(true_hw))                           # (Nb, C)

    # Conv2d(C -> C_red, 1x1, bias=False) + ReLU, batched over the Nb rows.
    h = jnp.dot(means, w1t_ref[...].astype(jnp.float32),
                preferred_element_type=jnp.float32)                 # (Nb, C_red)
    h = jnp.maximum(h, 0.0)

    # Conv2d(C_red -> C, 1x1, bias=False) + hsigmoid = relu6(z + 3) / 6.
    z = jnp.dot(h, w2t_ref[...].astype(jnp.float32),
                preferred_element_type=jnp.float32)                 # (Nb, C)
    scale = jnp.clip(z + 3.0, 0.0, 6.0) * (1.0 / 6.0)               # (Nb, C)

    # x * se(x): per-channel scale broadcast over HW lanes (no transposes).
    o_ref[...] = x * scale.astype(x.dtype)[:, :, None]


def _pick_batch_block(n, c, hw, dtype_bytes,
                      max_block_bytes=4 << 20, min_grid_steps=2):
    """Largest divisor Nb of n whose (Nb, C, HW) block fits the per-block
    budget while leaving >= min_grid_steps grid steps (when possible)."""
    best = 1
    for nb in range(1, n + 1):
        if n % nb:
            continue
        if nb * c * hw * dtype_bytes > max_block_bytes:
            continue
        if n // nb < min_grid_steps and nb != 1:
            continue
        best = nb
    return best


def se_module(x, w1, w2):
    """SeModule forward.  x: (N, C, H, W); w1: (C_red, C); w2: (C, C_red)."""
    N, C, H, W = x.shape
    HW = H * W
    C_red = w1.shape[0]

    # Lane-dense layout: pad flattened HW to a multiple of 128 so stores are
    # unmasked vst (not masked vst.msk).  Exact: the mean divides by the true
    # HW and the padded output columns are discarded below.
    HWp = ((HW + 127) // 128) * 128
    x_flat = x.reshape(N, C, HW)
    if HWp != HW:
        x_flat = jnp.pad(x_flat, ((0, 0), (0, 0), (0, HWp - HW)))

    # One-time host-side weight transposes -> no in-kernel XLU transposes.
    w1t = w1.T      # (C, C_red)
    w2t = w2.T      # (C_red, C)

    nb = _pick_batch_block(N, C, HWp, x.dtype.itemsize)
    grid = (N // nb,)

    out = pl.pallas_call(
        functools.partial(_se_kernel, true_hw=HW),
        out_shape=jax.ShapeDtypeStruct((N, C, HWp), x.dtype),
        grid_spec=pltpu.PrefetchScalarGridSpec(
            num_scalar_prefetch=0,
            grid=grid,
            in_specs=[
                pl.BlockSpec((nb, C, HWp), lambda n: (n, 0, 0)),
                pl.BlockSpec((C, C_red), lambda n: (0, 0)),   # resident weight
                pl.BlockSpec((C_red, C), lambda n: (0, 0)),   # resident weight
            ],
            out_specs=pl.BlockSpec((nb, C, HWp), lambda n: (n, 0, 0)),
        ),
        compiler_params=pltpu.CompilerParams(
            dimension_semantics=("parallel",),
            # Double-buffered in+out blocks (~4 * block bytes, block <= 4 MiB)
            # + tiny weights stay well under this on v5e/v6e/v7x.
            vmem_limit_bytes=32 * 1024 * 1024,
        ),
    )(x_flat, w1t, w2t)

    if HWp != HW:
        out = out[:, :, :HW]
    return out.reshape(N, C, H, W)


def se_module_ref(x, w1, w2):
    """Pure-JAX reference mirroring the PyTorch forward."""
    mean = jnp.mean(x, axis=(2, 3))                       # (N, C)
    h = jnp.maximum(mean @ w1.T, 0.0)                     # (N, C_red)
    z = h @ w2.T                                          # (N, C)
    scale = jnp.clip(z + 3.0, 0.0, 6.0) / 6.0             # (N, C)
    return x * scale[:, :, None, None]


if __name__ == "__main__":
    key = jax.random.PRNGKey(0)
    N, C, H, W = 2, 16, 16, 16
    reduction = 4
    C_red = C // reduction

    kx, k1, k2 = jax.random.split(key, 3)
    x = jax.random.normal(kx, (N, C, H, W), dtype=jnp.float32)
    # Deterministic synthetic 1x1-conv weights (bias=False in the module).
    w1 = jax.random.normal(k1, (C_red, C), dtype=jnp.float32) * 0.1
    w2 = jax.random.normal(k2, (C, C_red), dtype=jnp.float32) * 0.1

    out = jax.block_until_ready(se_module(x, w1, w2))

    ref = se_module_ref(x, w1, w2)
    assert out.shape == (N, C, H, W)
    assert jnp.allclose(out, ref, atol=1e-5, rtol=1e-5), "mismatch vs reference"

    print("KERNEL_OK")
</pallas_src>

<mosaic_0001>
module attributes {stable_mosaic.version = 11 : i64} {
  func.func @_se_kernel(%arg0: i32, %arg1: memref<1x16x256xf32, #tpu.memory_space<vmem>>, %arg2: memref<16x4xf32, #tpu.memory_space<vmem>>, %arg3: memref<4x16xf32, #tpu.memory_space<vmem>>, %arg4: memref<1x16x256xf32, #tpu.memory_space<vmem>>) attributes {dimension_semantics = [#tpu.dimension_semantics<parallel>], iteration_bounds = array<i64: 2>, scalar_prefetch = 0 : i64, scratch_operands = 0 : i64, tpu.core_type = #tpu.core_type<tc>, window_params = [{transform_indices = @transform_0, window_bounds = array<i64: 1, 16, 256>}, {pipeline_mode = #tpu.pipeline_mode<synchronous>, transform_indices = @transform_1, window_bounds = array<i64: 16, 4>}, {pipeline_mode = #tpu.pipeline_mode<synchronous>, transform_indices = @transform_2, window_bounds = array<i64: 4, 16>}, {transform_indices = @transform_3, window_bounds = array<i64: 1, 16, 256>}]} {
    %c0 = arith.constant 0 : index
    %c0_0 = arith.constant 0 : index
    %c0_1 = arith.constant 0 : index
    %0 = vector.load %arg1[%c0, %c0_0, %c0_1] : memref<1x16x256xf32, #tpu.memory_space<vmem>>, vector<1x16x256xf32>
    %cst = arith.constant dense<0.000000e+00> : vector<1x16xf32>
    %1 = vector.multi_reduction <add>, %0, %cst [2] : vector<1x16x256xf32> to vector<1x16xf32>
    %cst_2 = arith.constant 3.906250e-03 : f32
    %2 = vector.broadcast %cst_2 : f32 to vector<1x16xf32>
    %3 = arith.mulf %1, %2 : vector<1x16xf32>
    %c0_3 = arith.constant 0 : index
    %c0_4 = arith.constant 0 : index
    %4 = vector.load %arg2[%c0_3, %c0_4] : memref<16x4xf32, #tpu.memory_space<vmem>>, vector<16x4xf32>
    %cst_5 = arith.constant dense<0.000000e+00> : vector<1x4xf32>
    %5 = tpu.matmul %3, %4, %cst_5 {dimension_numbers = #tpu.dot_dimension_numbers<[1], [0], [0], [1], [0, 0, 1, 1], [], []>} : vector<1x16xf32>, vector<16x4xf32>, vector<1x4xf32> -> vector<1x4xf32>
    %cst_6 = arith.constant 0.000000e+00 : f32
    %6 = vector.broadcast %cst_6 : f32 to vector<1x4xf32>
    %7 = arith.maximumf %5, %6 : vector<1x4xf32>
    %c0_7 = arith.constant 0 : index
    %c0_8 = arith.constant 0 : index
    %8 = vector.load %arg3[%c0_7, %c0_8] : memref<4x16xf32, #tpu.memory_space<vmem>>, vector<4x16xf32>
    %cst_9 = arith.constant dense<0.000000e+00> : vector<1x16xf32>
    %9 = tpu.matmul %7, %8, %cst_9 {dimension_numbers = #tpu.dot_dimension_numbers<[1], [0], [0], [1], [0, 0, 1, 1], [], []>} : vector<1x4xf32>, vector<4x16xf32>, vector<1x16xf32> -> vector<1x16xf32>
    %cst_10 = arith.constant 3.000000e+00 : f32
    %10 = vector.broadcast %cst_10 : f32 to vector<1x16xf32>
    %11 = arith.addf %9, %10 : vector<1x16xf32>
    %cst_11 = arith.constant 0.000000e+00 : f32
    %cst_12 = arith.constant 6.000000e+00 : f32
    %12 = vector.broadcast %cst_11 : f32 to vector<1x16xf32>
    %13 = arith.maximumf %12, %11 : vector<1x16xf32>
    %14 = vector.broadcast %cst_12 : f32 to vector<1x16xf32>
    %15 = arith.minimumf %14, %13 : vector<1x16xf32>
    %cst_13 = arith.constant 0.166666672 : f32
    %16 = vector.broadcast %cst_13 : f32 to vector<1x16xf32>
    %17 = arith.mulf %15, %16 : vector<1x16xf32>
    %18 = vector.shape_cast %17 : vector<1x16xf32> to vector<1x16x1xf32>
    %19 = vector.broadcast %18 : vector<1x16x1xf32> to vector<1x16x256xf32>
    %20 = arith.mulf %0, %19 : vector<1x16x256xf32>
    %c0_14 = arith.constant 0 : index
    %c0_15 = arith.constant 0 : index
    %c0_16 = arith.constant 0 : index
    %21 = vector.load %arg4[%c0_14, %c0_15, %c0_16] : memref<1x16x256xf32, #tpu.memory_space<vmem>>, vector<1x16x256xf32>
    tpu.vector_store %arg4[%c0_14, %c0_15, %c0_16], %20 {strides = array<i32>} : memref<1x16x256xf32, #tpu.memory_space<vmem>>, vector<1x16x256xf32>,
    return
  }
  func.func @transform_0(%arg0: i32) -> (i32, i32, i32) {
    %c0_i32 = arith.constant 0 : i32
    %c0_i32_0 = arith.constant 0 : i32
    %c0_i32_1 = arith.constant 0 : i32
    return %arg0, %c0_i32, %c0_i32_0 : i32, i32, i32
  }
  func.func @transform_1(%arg0: i32) -> (i32, i32) {
    %c0_i32 = arith.constant 0 : i32
    %c0_i32_0 = arith.constant 0 : i32
    %c0_i32_1 = arith.constant 0 : i32
    return %c0_i32, %c0_i32_0 : i32, i32
  }
  func.func @transform_2(%arg0: i32) -> (i32, i32) {
    %c0_i32 = arith.constant 0 : i32
    %c0_i32_0 = arith.constant 0 : i32
    %c0_i32_1 = arith.constant 0 : i32
    return %c0_i32, %c0_i32_0 : i32, i32
  }
  func.func @transform_3(%arg0: i32) -> (i32, i32, i32) {
    %c0_i32 = arith.constant 0 : i32
    %c0_i32_0 = arith.constant 0 : i32
    %c0_i32_1 = arith.constant 0 : i32
    return %arg0, %c0_i32, %c0_i32_0 : i32, i32, i32
  }
}

</mosaic_0001>

<bundles_post_ra>
// kernel: tpu_custom_call.1
= control target key start
LH: loop header
LB: loop body
LE: loop exit
PB: predicated region body
PF: predicated region fallthrough
CT: control target
= control target key end

     0   :  { %8 = vsyncpa [#allocation3], 0  ;;  %s714_s0 = inlined_call_operand.hbm [shape: f32[2,16,256], index: 0, kind: input, shape index: {}]   ;;  %s715_s1 = inlined_call_operand.vmem [shape: f32[16,4], index: 1, kind: input, shape index: {}]   ;;  %s716_s2 = inlined_call_operand.vmem [shape: f32[4,16], index: 2, kind: input, shape index: {}]   ;;  %s717_s3 = inlined_call_operand.hbm [shape: f32[2,16,256], index: 3, kind: output, shape index: {}]  }
   0x1   :  { %10 = vsyncpa [#allocation3 + $0x1], 0 }
   0x2   :  { %11 = vsyncpa [#allocation4], 0 }
   0x3   :  { %13 = vsyncpa [#allocation4 + $0x1], 0  ;;  %s574_s12 = smov 0   ;;  %s576_s13 = smov 0  }
   0x4   :  { %s578_s14 = smov 0   ;;  %s580_s15 = smov 0  }
   0x5 LB: > { %s595_s16 = sadd.s32 4294967295, %s548_s15   ;;  %s380_s17 = sadd.s32 4294967294, %s548_s15   ;;  %s548_s15 = sphi %s580_s15, %s727_s15   ;;  %s544_s14 = sphi %s578_s14, %s726_s14   ;;  %s540_s13 = sphi %s576_s13, %s725_s13   ;;  %s536_s12 = sphi %s574_s12, %s724_s12  }
   0x6   : > { %s599_s18 = sadd.s32 1, %s548_s15   ;;  %s26_s19 = sadd.s32 1, %s544_s14 }
   0x7   : > { %s23_s20 = ssub.s32 %s548_s15, %s599_s18  ;;  %p33_p0 = scmp.ne.s32.totalorder %s544_s14, %s540_s13 }
   0x8   : > { %p24_p1 = scmp.eq.s32.totalorder %s23_s20, 0  ;;  %p34_p2 = scmp.eq.s32.totalorder %s548_s15, 0 }
   0x9   : > { %p39_p3 = scmp.ne.s32.totalorder %s540_s13, %s536_s12  ;;  %p40_p4 = scmp.eq.s32.totalorder %s595_s16, 0 }
   0xa   : > { %s611_s21 = scalar_select %p24_p1, %s544_s14, %s26_s19  }
   0xb   : > { %p613_p5 = por %p34_p2, %p33_p0  ;;  %p617_p6 = por %p40_p4, %p39_p3 }
   0xc   : > { %p105_p7 = scmp.eq.s32.totalorder %s595_s16, 1  ;;  %p111_p8 = scmp.eq.s32.totalorder %s380_s17, 1 }
   0xd   : > { %p411_p10 = scmp.lt.s32.totalorder %s548_s15, 2  ;;  %s137_s26 = sand.u32 1, %s544_s14  }
   0xe   : > { %p624_p11 = por %p105_p7, %p33_p0  ;;  %p628_p12 = por %p111_p8, %p39_p3 }
   0xf   : > { %s397_s27 = sshll.u32 %s548_s15, 5  ;;  %s383_s28 = sshll.u32 %s137_s26, 5 }
  0x10   : > { %s146_s4 = scalar_lea.hbm %s714_s0, %s397_s27  ;;  %s141_s6 = scalar_lea.vmem [#allocation2], %s383_s28 }
  0x11   : > { %s147_s5 = sshll.u32 %s146_s4, 4  ;;  %s149_s7 = sshll.u32 %s141_s6, 4  ;;  %s148_s5 = int_to_ptr.hbm [resolvable:$true] %s147_s5  ;;  %s150_s7 = int_to_ptr.vmem [resolvable:$true] %s149_s7 }
  0x12   : > { %p639_p13 = pnand %p411_p10, %p613_p5  ;;  %p386_p0 = scmp.ge.s32.totalorder %s548_s15, 1 }
  0x13   : > { %p157_p1 = scmp.lt.s32.totalorder %s548_s15, 3  ;;  %s138_s9 = scalar_lea.sflag [#allocation3], %s137_s26 }
  0x14   : > { %s452_s10 = sshra.s32 %s148_s5, 4  ;;  %p456_p3 = pneg %p639_p13  ;;  %s453_s10 = int_to_ptr.hbm [resolvable:$true] %s452_s10 }
  0x15   : > { %s454_s11 = scalar_lea.hbm %s453_s10, 32  ;;  %s459_s20 = scalar_lea.hbm %s714_s0, 64 }
  0x16   : > { %p455_p2 = scmp.ne.s32.totalorder %s453_s10, %s454_s11  ;;  %p460_p5 = scmp.lt.s32.totalorder %s453_s10, %s714_s0 }
  0x17   : > { %p461_p8 = scmp.lt.s32.totalorder %s459_s20, %s454_s11 }
  0x18   : > { %p457_p4 = pnand %p456_p3, %p455_p2 }
  0x19   : > { %p462_p10 = por %p461_p8, %p460_p5 }
  0x1a   : > { %p458_p7 = pneg %p457_p4 }
  0x1c   : > { %p463_p9 = pnand %p462_p10, %p458_p7 }
  0x1e   : > { %466 = shalt.err (!%p463_p9)
}
  0x1f   : > { %s550_s26 = smov 256   ;;  %s551_s28 = smov 16  }
  0x20   : > { %406 = dma.hbm_to_vmem [thread:$0]  (!%p639_p13), %s148_s5, 512, %s150_s7, %s138_s9, %s550_s26, %s550_s26, %s551_s28  }
  0x21   : > { %p158_p2 = pnand %p386_p0, %p157_p1 }
  0x22   : > { %s660_s29 = sand.u32 (!%p158_p2), 1, %s540_s13  }
  0x23   : > { %161 = sbr.rel (%p158_p2) target bundleno = 575 (0x23f), region = 32  ;;  %s387_s30 = sshll.u32 (!%p158_p2), %s660_s29, 5 }
  0x24   : > { %s164_s4 = scalar_lea.sflag (!%p158_p2), [#allocation3], %s660_s29  ;;  %s167_s6 = scalar_lea.vmem (!%p158_p2), [#allocation2], %s387_s30 }
  0x28   : > { %527 = dma.done.wait (%p617_p6), %s164_s4, 512  }
  0x29   : > { %529 = vsyncadd (%p617_p6), %s164_s4, 4294966784  ;;  %v191_v0 = vld [vmem:[%s167_s6] sm:$0xff]  ;;  %v192_v1 = vld [vmem:[%s167_s6 + $0x8] sm:$0xff]  ;;  %v207_v9 = vlaneseq  ;;  %vm212_vm0 = vcmask 130112   ;;  %vm214_vm1 = vcmask 130048   ;;  %vm243_vm2 = vcmask 1043456  }
  0x2a   : > { %v195_v2 = vadd.f32 %v192_v1, %v191_v0  ;;  %v193_v3 = vld [vmem:[%s167_s6 + $0x10] sm:$0xff]  ;;  %v194_v4 = vld [vmem:[%s167_s6 + $0x18] sm:$0xff]  ;;  %v204_v6 = vld [vmem:[%s715_s1 + $0x8] sm:$0xff]  ;;  %vm239_vm3 = vcmask 31744   ;;  %s190_s11 = scalar_lea.vmem [#allocation5], %s387_s30  ;;  %s398_s17 = sshll.u32 %s595_s16, 5 }
  0x2b   : > { %v198_v5 = vadd.f32 %v194_v4, %v193_v3  ;;  %231 = vmatpush.msra.mxu0 %v204_v6  ;;  %v203_v7 = vld [vmem:[%s715_s1] sm:$0xff]  ;;  %v208_v10 = vand.u32 127, %v207_v9  ;;  %v272_v21 = vshrl.u32 %v207_v9, 7  ;;  %s303_s22 = scalar_lea.hbm %s717_s3, %s398_s17  ;;  %s304_s27 = sshll.u32 %s190_s11, 4  ;;  %s305_s27 = int_to_ptr.vmem [resolvable:$true] %s304_s27 }
  0x2c   : > { %196 = vadd.xlane.f32.xlu0 %v195_v2  ;;  %v238_v18 = vld [vmem:[%s716_s2] sm:$0xf]  ;;  %s306_s26 = sshll.u32 %s303_s22, 4  ;;  %s292_s28 = scalar_lea.sflag [#allocation4], %s660_s29  ;;  %s307_s26 = int_to_ptr.hbm [resolvable:$true] %s306_s26 }
  0x2d   : > { %232 = vmatpush.msra.mxu0 %v203_v7  ;;  %v210_v12 = vadd.s32 4294967288, %v208_v10  ;;  %390 = vmatpush.msk.msra.mxu1 %vm243_vm2, %v238_v18  ;;  %v279_v22 = vadd.s32 8, %v272_v21  ;;  %s496_s4 = sshra.s32 %s307_s26, 4  ;;  %s502_s5 = scalar_lea.hbm %s717_s3, 64  ;;  %s497_s4 = int_to_ptr.hbm [resolvable:$true] %s496_s4 }
  0x2e   : > { %449 = vset.pattern.permute.xlu1 %v272_v21  ;;  %s498_s30 = scalar_lea.hbm %s497_s4, 32  ;;  %p503_p0 = scmp.lt.s32.totalorder %s497_s4, %s717_s3 }
  0x2f   : > { %451 = vset.pattern.permute.xlu0 %v279_v22  ;;  %p499_p6 = scmp.ne.s32.totalorder %s497_s4, %s498_s30  ;;  %p504_p1 = scmp.lt.s32.totalorder %s502_s5, %s498_s30 }
  0x31   : > { %p500_p9 = pnand %p499_p6, %p624_p11  ;;  %p505_p3 = por %p504_p1, %p503_p0 }
  0x33   : > { %p501_p13 = pneg %p500_p9 }
  0x34   : > { %199 = vadd.xlane.f32.xlu0 %v198_v5 }
  0x35   : > { %p506_p4 = pnand %p505_p3, %p501_p13 }
  0x9f   : > { %v197_v8 = vpop.xlane.xlu0 %196 }
  0xa0   : > { %v201_v11 = vmul.f32 0.00390625, %v197_v8 }
  0xa2   : > { %v209_v15 = vperm.slane %v201_v11, %v208_v10 }
  0xa7   : > { %v200_v13 = vpop.xlane.xlu0 %199 }
  0xa8   : > { %v202_v14 = vmul.f32 0.00390625, %v200_v13 }
  0xaa   : > { %v211_v16 = vperm.slane %v202_v14, %v210_v12 }
  0xac   : > { %v213_v17 = vsel %vm212_vm0, %v211_v16, %v209_v15 }
  0xad   : > { %389 = vmatmul.msk.f32.vlgmr.msra.gmra.mxu0 %vm214_vm1, %v213_v17 }
 0x12a   : > { %v234_v19 = vpop.f32.mrf.mxu0 }
 0x12b   : > { %v237_v20 = vmax.f32 %v234_v19, 0.0 }
 0x12d   : > { %391 = vmatmul.msk.f32.vlgmr.msra.gmra.mxu1 %vm239_vm3, %v237_v20 }
 0x1aa   : > { %v264_v23 = vpop.f32.mrf.mxu1 }
 0x1ab   : > { %v265_v24 = vadd.f32 3.0, %v264_v23 }
 0x1ad   : > { %v267_v25 = vmax.f32 %v265_v24, 0.0 }
 0x1af   : > { %v268_v26 = vmin.f32 %v267_v25, 6.0 }
 0x1b1   : > { %v269_v27 = vmul.f32 0.16666667, %v268_v26 }
 0x1b3   : > { %v270_v28 = vperm.slane %v269_v27, 0 }
 0x1b5   : > { %275 = vperm.xlu1 %449, %v270_v28  }
 0x1bd   : > { %450 = vset.pattern.permute.xlu1 %v279_v22 }
 0x1c5   : > { %281 = vperm.xlu1 %450, %v270_v28  }
 0x227   : > { %v276_v29 = vpop.permute.xlu1 %275 }
 0x228   : > { %v283_v30 = vmul.f32 %v276_v29, %v191_v0  ;;  %v284_v31 = vmul.f32 %v276_v29, %v192_v1 }
 0x22a   : > { %287 = vst [vmem:[%s190_s11] sm:$0xff] %v283_v30 }
 0x22b   : > { %288 = vst [vmem:[%s190_s11 + $0x8] sm:$0xff] %v284_v31 }
 0x237   : > { %v282_v32 = vpop.permute.xlu1 %281 }
 0x238   : > { %v285_v33 = vmul.f32 %v282_v32, %v193_v3  ;;  %v286_v34 = vmul.f32 %v282_v32, %v194_v4 }
 0x23a   : > { %289 = vst [vmem:[%s190_s11 + $0x10] sm:$0xff] %v285_v33 }
 0x23b   : > { %290 = vst [vmem:[%s190_s11 + $0x18] sm:$0xff] %v286_v34 }
 0x23c   : > { %509 = shalt.err (!%p506_p4)
}
 0x23d   : > { %s552_s29 = smov 256   ;;  %s553_s9 = smov 16  }
 0x23e   : > { %401 = dma.vmem_to_hbm [thread:$0]  (%p624_p11), %s305_s27, 512, %s307_s26, %s292_s28, %s552_s29, %s552_s29, %s553_s9  }
 0x23f PF: > { %s321_s23 = sand.u32 1, %s536_s12   ;;  %p723_p7 = scmp.ge.s32.totalorder %s548_s15, 2 }
 0x240   : > { %s322_s10 = scalar_lea.sflag [#allocation4], %s321_s23 }
 0x241   : > { %p408_p5 = pnand %p723_p7, %p628_p12 }
 0x243   : > { %p409_p8 = pneg %p408_p5 }
 0x245   : > { %531 = dma.done.wait (%p409_p8), %s322_s10, 512  }
 0x246   : > { %533 = vsyncadd (%p409_p8), %s322_s10, 4294966784  ;;  %p16_p10 = scmp.ge.s32.totalorder %s599_s18, 4   ;;  %s724_s12 = smov %s540_s13 }
 0x247   : > { %s725_s13 = smov %s544_s14  ;;  %s726_s14 = smov %s611_s21 }
 0x248   : > { %s727_s15 = smov %s599_s18  ;;  %18 = sbr.rel (!%p16_p10) target bundleno = 5 (0x5), region = 77 }
 0x24d   :  { %328 = vsyncpa [#allocation3], 1 }
 0x24e   :  { %330 = vsyncpa [#allocation3 + $0x1], 1 }
 0x24f   :  { %331 = vsyncpa [#allocation4], 1 }
 0x250   :  { %333 = vsyncpa [#allocation4 + $0x1], 1 }

</bundles_post_ra>
